<compile_context>
chip_gen: v6e
topology: v6e:2x2x1
jax: 0.10.0
libtpu: 0.0.40
codegen_flags: <defaults>
</compile_context>

<pallas_src>
import jax
import jax.numpy as jnp
from jax.experimental import pallas as pl
from jax.experimental.pallas import tpu as pltpu


def _make_ls_ce_kernel(n, c, tile_n, ignore_index, needs_row_mask):
    def kernel(logits_ref, target_ref, out_ref):
        i = pl.program_id(0)

        x_raw = logits_ref[...]                          # (tile_n, C) load dtype
        x = x_raw.astype(jnp.float32)                    # f32 path for max/exp
        tgt = target_ref[...]                            # (tile_n, 1) int32

        # log-softmax pieces without materializing log_pred.
        m = jnp.max(x, axis=-1, keepdims=True)           # (tile_n, 1)
        lse = jnp.log(jnp.sum(jnp.exp(x - m), axis=-1, keepdims=True))
        mls = m + lse                                     # (tile_n, 1)

        # Smoothing term: -sum_j logp = C*(m+lse) - sum_j x.
        # f32 accumulation directly from the loaded dtype (no extra f32 pass).
        row_sum_x = jnp.sum(x_raw, axis=-1, keepdims=True, dtype=jnp.float32)
        row_neg_sum = jnp.float32(c) * mls - row_sum_x    # (tile_n, 1)

        # NLL term: gather x[i, t_i] via one-hot compare on the raw logits.
        # NOTE: targets outside [0, C) that are not ignore_index gather 0
        # (PyTorch would raise instead).
        col = jax.lax.broadcasted_iota(jnp.int32, (tile_n, c), 1)
        zero = jnp.array(0, dtype=x_raw.dtype)
        gathered = jnp.sum(jnp.where(col == tgt, x_raw, zero), axis=-1,
                           keepdims=True, dtype=jnp.float32)
        tgt_valid = tgt != ignore_index                   # (tile_n, 1) bool

        if needs_row_mask:
            # Mask padded rows of the (partial) last tile.  Keep select-masking
            # so undefined Inf/NaN in padded rows never reaches the sums.
            row_ids = (jax.lax.broadcasted_iota(jnp.int32, (tile_n, 1), 0)
                       + i * tile_n)
            row_valid = row_ids < n
            row_neg_sum = jnp.where(row_valid, row_neg_sum, 0.0)
            tgt_valid = jnp.logical_and(row_valid, tgt_valid)

        nll_terms = jnp.where(tgt_valid, mls - gathered, 0.0)   # (tile_n, 1)

        smooth_p = jnp.sum(row_neg_sum)
        nll_p = jnp.sum(nll_terms)
        cnt_p = jnp.sum(tgt_valid.astype(jnp.float32))

        # Pack the per-tile partials into this tile's lane-dense (8,128) block:
        # [0,0]=smooth, [0,1]=nll, [0,2]=valid count, everything else exact 0,
        # so the wrapper can reduce with a single sum over rows.
        sub = jax.lax.broadcasted_iota(jnp.int32, (8, 128), 0)
        lane = jax.lax.broadcasted_iota(jnp.int32, (8, 128), 1)
        row0 = sub == 0
        packed = jnp.where(jnp.logical_and(row0, lane == 0), smooth_p,
                 jnp.where(jnp.logical_and(row0, lane == 1), nll_p,
                 jnp.where(jnp.logical_and(row0, lane == 2), cnt_p, 0.0)))
        out_ref[...] = packed

    return kernel


def _vmem_capacity_bytes():
    try:
        cap = int(getattr(pltpu.get_tpu_info(), "vmem_capacity_bytes", 0))
        if cap > 0:
            return cap
    except Exception:
        pass
    return 64 * 1024 * 1024          # conservative fallback (v7x-sized VMEM)


def _choose_tile_n(n, c, itemsize, vmem_cap):
    """Largest row tile whose pipeline working set fits comfortably in VMEM."""
    usable = (vmem_cap * 3) // 4                 # scoped-VMEM headroom
    # Live bytes per block element: 2 double-buffered raw input copies plus
    # roughly two f32-block temporaries (upcast + exp) while it is processed.
    per_elem = 2 * itemsize + 2 * 4
    max_elems = max(1, usable // per_elem)
    align = 16 if itemsize < 4 else 8            # packed sublanes for bf16
    t = max_elems // max(1, c)
    t = max(align, (t // align) * align)
    t = min(t, 8192)                             # bounds lane-padded (N,1) temps
    if t >= n:
        return int(n)                            # single full-extent block
    return int(t)


def label_smoothing_cross_entropy(output, target, eps=0.1, reduction='mean',
                                  ignore_index=-100, tile_n=None):
    """output: (N, C) float logits (f32 or bf16); target: (N, 1) or (N,) ints."""
    if reduction not in ('mean', 'sum'):
        # TODO(synk): reduction='none' returns a per-row vector; not implemented.
        raise NotImplementedError("reduction must be 'mean' or 'sum'")
    n, c = int(output.shape[0]), int(output.shape[1])
    target2d = jnp.reshape(target, (n, 1)).astype(jnp.int32)

    itemsize = jnp.dtype(output.dtype).itemsize
    vmem_cap = _vmem_capacity_bytes()
    if tile_n is None:
        tile_n = _choose_tile_n(n, c, itemsize, vmem_cap)
    tile_n = int(tile_n)
    if tile_n >= n:
        tile_n = n
    num_tiles = int(pl.cdiv(n, tile_n))
    needs_row_mask = (n % tile_n) != 0

    # Scoped-VMEM estimate: double-buffered inputs + f32 temporaries + slack.
    est = (2 * tile_n * c * itemsize            # double-buffered logits blocks
           + 2 * tile_n * c * 4                 # f32 upcast / exp temporaries
           + 4 * tile_n * 512                   # lane-padded (tile_n,1) temps
           + 2 * tile_n * 4                     # target blocks
           + (4 << 20))                         # slack
    vmem_limit = int(min(max(est, 32 << 20), (vmem_cap * 9) // 10))

    kernel = _make_ls_ce_kernel(n, c, tile_n, int(ignore_index), needs_row_mask)
    partials = pl.pallas_call(
        kernel,
        out_shape=jax.ShapeDtypeStruct((num_tiles * 8, 128), jnp.float32),
        grid_spec=pltpu.PrefetchScalarGridSpec(
            num_scalar_prefetch=0,
            grid=(num_tiles,),
            in_specs=[
                pl.BlockSpec((tile_n, c), lambda i: (i, 0)),
                pl.BlockSpec((tile_n, 1), lambda i: (i, 0)),
            ],
            out_specs=pl.BlockSpec((8, 128), lambda i: (i, 0)),
        ),
        compiler_params=pltpu.CompilerParams(
            dimension_semantics=("parallel",),   # megacore-shardable on v7x
            vmem_limit_bytes=vmem_limit,
        ),
    )(output, target2d)

    # Trivial epilogue: only lanes 0..2 of sublane 0 of each tile are nonzero.
    totals = jnp.sum(partials, axis=0)           # (128,)
    smooth_sum, nll_sum, valid_cnt = totals[0], totals[1], totals[2]
    eps = jnp.float32(eps)
    if reduction == 'sum':
        smooth, nll = smooth_sum, nll_sum
    else:  # 'mean'
        smooth = smooth_sum / jnp.float32(n)
        # NOTE: 0/0 -> NaN if every target == ignore_index (PyTorch-like).
        nll = nll_sum / valid_cnt
    return smooth * (eps / jnp.float32(c)) + (1.0 - eps) * nll


def _reference(logits, target, eps, reduction, ignore_index):
    n, c = logits.shape
    t = jnp.reshape(target, (n,)).astype(jnp.int32)
    logp = jax.nn.log_softmax(logits.astype(jnp.float32), axis=-1)
    if reduction == 'sum':
        smooth = -jnp.sum(logp)
    else:
        smooth = jnp.mean(-jnp.sum(logp, axis=-1))
    valid = t != ignore_index
    picked = jnp.take_along_axis(logp, jnp.clip(t, 0, c - 1)[:, None], axis=-1)[:, 0]
    nll_terms = jnp.where(valid, -picked, 0.0)
    nll = (jnp.sum(nll_terms) if reduction == 'sum'
           else jnp.sum(nll_terms) / jnp.sum(valid))
    return smooth * eps / c + (1.0 - eps) * nll


if __name__ == "__main__":
    key = jax.random.PRNGKey(0)
    ok = True

    # Case 1: small, single-tile, both reductions, with one ignored row.
    k1, k2, key = jax.random.split(key, 3)
    n, c = 8, 32
    logits = jax.random.normal(k1, (n, c), dtype=jnp.float32)
    target = jax.random.randint(k2, (n, 1), 0, c, dtype=jnp.int32)
    target = target.at[3, 0].set(-100)
    for red in ('mean', 'sum'):
        got = label_smoothing_cross_entropy(logits, target, eps=0.1,
                                            reduction=red, ignore_index=-100)
        jax.block_until_ready(got)
        want = _reference(logits, target, 0.1, red, -100)
        ok &= bool(jnp.allclose(got, want, rtol=1e-5, atol=1e-5))

    # Case 2: multi-tile "parallel" grid with a padded (partial) last tile.
    k1, k2, key = jax.random.split(key, 3)
    n, c = 200, 32
    logits = jax.random.normal(k1, (n, c), dtype=jnp.float32)
    target = jax.random.randint(k2, (n, 1), 0, c, dtype=jnp.int32)
    target = target.at[17, 0].set(-100)
    got = label_smoothing_cross_entropy(logits, target, eps=0.1,
                                        reduction='mean', ignore_index=-100,
                                        tile_n=64)   # 4 tiles, last one partial
    jax.block_until_ready(got)
    want = _reference(logits, target, 0.1, 'mean', -100)
    ok &= bool(jnp.allclose(got, want, rtol=1e-5, atol=1e-5))

    # Case 3: bf16 logits (bf16-native row sums / gather, f32 accumulation).
    k1, k2, key = jax.random.split(key, 3)
    n, c = 64, 128
    logits = jax.random.normal(k1, (n, c), dtype=jnp.float32).astype(jnp.bfloat16)
    target = jax.random.randint(k2, (n, 1), 0, c, dtype=jnp.int32)
    got = label_smoothing_cross_entropy(logits, target, eps=0.1,
                                        reduction='mean', ignore_index=-100)
    jax.block_until_ready(got)
    want = _reference(logits, target, 0.1, 'mean', -100)
    ok &= bool(jnp.allclose(got, want, rtol=1e-4, atol=1e-4))

    print("KERNEL_OK" if ok else "MISMATCH")
</pallas_src>

<mosaic_0001>
module attributes {stable_mosaic.version = 11 : i64} {
  func.func @kernel(%arg0: i32, %arg1: memref<8x32xf32, #tpu.memory_space<vmem>>, %arg2: memref<8x1xi32, #tpu.memory_space<vmem>>, %arg3: memref<8x128xf32, #tpu.memory_space<vmem>>) attributes {dimension_semantics = [#tpu.dimension_semantics<parallel>], iteration_bounds = array<i64: 1>, scalar_prefetch = 0 : i64, scratch_operands = 0 : i64, tpu.core_type = #tpu.core_type<tc>, window_params = [{transform_indices = @transform_0, window_bounds = array<i64: 8, 32>}, {transform_indices = @transform_1, window_bounds = array<i64: 8, 1>}, {transform_indices = @transform_2, window_bounds = array<i64: 8, 128>}]} {
    %c0 = arith.constant 0 : index
    %c0_0 = arith.constant 0 : index
    %0 = vector.load %arg1[%c0, %c0_0] : memref<8x32xf32, #tpu.memory_space<vmem>>, vector<8x32xf32>
    %c0_1 = arith.constant 0 : index
    %c0_2 = arith.constant 0 : index
    %1 = vector.load %arg2[%c0_1, %c0_2] : memref<8x1xi32, #tpu.memory_space<vmem>>, vector<8x1xi32>
    %cst = arith.constant dense<0xFF800000> : vector<8xf32>
    %2 = vector.multi_reduction <maximumf>, %0, %cst [1] : vector<8x32xf32> to vector<8xf32>
    %3 = vector.shape_cast %2 : vector<8xf32> to vector<8x1xf32>
    %4 = vector.broadcast %3 : vector<8x1xf32> to vector<8x32xf32>
    %5 = arith.subf %0, %4 : vector<8x32xf32>
    %6 = math.exp %5 : vector<8x32xf32>
    %cst_3 = arith.constant dense<0.000000e+00> : vector<8xf32>
    %7 = vector.multi_reduction <add>, %6, %cst_3 [1] : vector<8x32xf32> to vector<8xf32>
    %8 = vector.shape_cast %7 : vector<8xf32> to vector<8x1xf32>
    %9 = math.log %8 : vector<8x1xf32>
    %10 = arith.addf %3, %9 : vector<8x1xf32>
    %cst_4 = arith.constant dense<0.000000e+00> : vector<8xf32>
    %11 = vector.multi_reduction <add>, %0, %cst_4 [1] : vector<8x32xf32> to vector<8xf32>
    %12 = vector.shape_cast %11 : vector<8xf32> to vector<8x1xf32>
    %cst_5 = arith.constant 3.200000e+01 : f32
    %13 = vector.broadcast %cst_5 : f32 to vector<8x1xf32>
    %14 = arith.mulf %13, %10 : vector<8x1xf32>
    %15 = arith.subf %14, %12 : vector<8x1xf32>
    %16 = tpu.iota {dimensions = array<i32: 1>} : vector<8x32xi32>
    %17 = vector.broadcast %1 : vector<8x1xi32> to vector<8x32xi32>
    %18 = arith.cmpi eq, %16, %17 : vector<8x32xi32>
    %cst_6 = arith.constant 0.000000e+00 : f32
    %19 = vector.broadcast %cst_6 : f32 to vector<8x32xf32>
    %20 = arith.select %18, %0, %19 : vector<8x32xi1>, vector<8x32xf32>
    %cst_7 = arith.constant dense<0.000000e+00> : vector<8xf32>
    %21 = vector.multi_reduction <add>, %20, %cst_7 [1] : vector<8x32xf32> to vector<8xf32>
    %22 = vector.shape_cast %21 : vector<8xf32> to vector<8x1xf32>
    %c-100_i32 = arith.constant -100 : i32
    %23 = vector.broadcast %c-100_i32 : i32 to vector<8x1xi32>
    %24 = arith.cmpi ne, %1, %23 : vector<8x1xi32>
    %25 = arith.subf %10, %22 : vector<8x1xf32>
    %cst_8 = arith.constant 0.000000e+00 : f32
    %26 = vector.broadcast %cst_8 : f32 to vector<8x1xf32>
    %27 = arith.select %24, %25, %26 : vector<8x1xi1>, vector<8x1xf32>
    %28 = vector.shape_cast %15 : vector<8x1xf32> to vector<1x8x1xf32>
    %cst_9 = arith.constant dense<0.000000e+00> : vector<1xf32>
    %29 = vector.multi_reduction <add>, %28, %cst_9 [1, 2] : vector<1x8x1xf32> to vector<1xf32>
    %30 = vector.shape_cast %29 : vector<1xf32> to vector<1x1x1xf32>
    %31 = vector.extract %30[0, 0, 0] : f32 from vector<1x1x1xf32>
    %32 = vector.shape_cast %27 : vector<8x1xf32> to vector<1x8x1xf32>
    %cst_10 = arith.constant dense<0.000000e+00> : vector<1xf32>
    %33 = vector.multi_reduction <add>, %32, %cst_10 [1, 2] : vector<1x8x1xf32> to vector<1xf32>
    %34 = vector.shape_cast %33 : vector<1xf32> to vector<1x1x1xf32>
    %35 = vector.extract %34[0, 0, 0] : f32 from vector<1x1x1xf32>
    %36 = arith.extui %24 : vector<8x1xi1> to vector<8x1xi32>
    %37 = arith.sitofp %36 : vector<8x1xi32> to vector<8x1xf32>
    %38 = vector.shape_cast %37 : vector<8x1xf32> to vector<1x8x1xf32>
    %cst_11 = arith.constant dense<0.000000e+00> : vector<1xf32>
    %39 = vector.multi_reduction <add>, %38, %cst_11 [1, 2] : vector<1x8x1xf32> to vector<1xf32>
    %40 = vector.shape_cast %39 : vector<1xf32> to vector<1x1x1xf32>
    %41 = vector.extract %40[0, 0, 0] : f32 from vector<1x1x1xf32>
    %42 = tpu.iota {dimensions = array<i32: 0>} : vector<8x128xi32>
    %43 = tpu.iota {dimensions = array<i32: 1>} : vector<8x128xi32>
    %c0_i32 = arith.constant 0 : i32
    %44 = vector.broadcast %c0_i32 : i32 to vector<8x128xi32>
    %45 = arith.cmpi eq, %42, %44 : vector<8x128xi32>
    %c0_i32_12 = arith.constant 0 : i32
    %46 = vector.broadcast %c0_i32_12 : i32 to vector<8x128xi32>
    %47 = arith.cmpi eq, %43, %46 : vector<8x128xi32>
    %48 = arith.andi %45, %47 : vector<8x128xi1>
    %c1_i32 = arith.constant 1 : i32
    %49 = vector.broadcast %c1_i32 : i32 to vector<8x128xi32>
    %50 = arith.cmpi eq, %43, %49 : vector<8x128xi32>
    %51 = arith.andi %45, %50 : vector<8x128xi1>
    %c2_i32 = arith.constant 2 : i32
    %52 = vector.broadcast %c2_i32 : i32 to vector<8x128xi32>
    %53 = arith.cmpi eq, %43, %52 : vector<8x128xi32>
    %54 = arith.andi %45, %53 : vector<8x128xi1>
    %cst_13 = arith.constant 0.000000e+00 : f32
    %55 = vector.broadcast %41 : f32 to vector<8x128xf32>
    %56 = vector.broadcast %cst_13 : f32 to vector<8x128xf32>
    %57 = arith.select %54, %55, %56 : vector<8x128xi1>, vector<8x128xf32>
    %58 = vector.broadcast %35 : f32 to vector<8x128xf32>
    %59 = arith.select %51, %58, %57 : vector<8x128xi1>, vector<8x128xf32>
    %60 = vector.broadcast %31 : f32 to vector<8x128xf32>
    %61 = arith.select %48, %60, %59 : vector<8x128xi1>, vector<8x128xf32>
    %c0_14 = arith.constant 0 : index
    %c0_15 = arith.constant 0 : index
    %62 = vector.load %arg3[%c0_14, %c0_15] : memref<8x128xf32, #tpu.memory_space<vmem>>, vector<8x128xf32>
    tpu.vector_store %arg3[%c0_14, %c0_15], %61 {strides = array<i32>} : memref<8x128xf32, #tpu.memory_space<vmem>>, vector<8x128xf32>,
    return
  }
  func.func @transform_0(%arg0: i32) -> (i32, i32) {
    %c0_i32 = arith.constant 0 : i32
    %c0_i32_0 = arith.constant 0 : i32
    return %arg0, %c0_i32 : i32, i32
  }
  func.func @transform_1(%arg0: i32) -> (i32, i32) {
    %c0_i32 = arith.constant 0 : i32
    %c0_i32_0 = arith.constant 0 : i32
    return %arg0, %c0_i32 : i32, i32
  }
  func.func @transform_2(%arg0: i32) -> (i32, i32) {
    %c0_i32 = arith.constant 0 : i32
    %c0_i32_0 = arith.constant 0 : i32
    return %arg0, %c0_i32 : i32, i32
  }
}

</mosaic_0001>

<bundles_post_ra>
// kernel: tpu_custom_call.1
= control target key start
LH: loop header
LB: loop body
LE: loop exit
PB: predicated region body
PF: predicated region fallthrough
CT: control target
= control target key end

     0   :  { %vm14_vm0 = vcmask 261120   ;;  %s182_s0 = inlined_call_operand.vmem [shape: f32[8,32], index: 0, kind: input, shape index: {}]   ;;  %s183_s1 = inlined_call_operand.vmem [shape: s32[8,1], index: 1, kind: input, shape index: {}]   ;;  %s184_s2 = inlined_call_operand.hbm [shape: f32[8,128], index: 2, kind: output, shape index: {}]  }
   0x1   :  { %v12_v0 = vld [vmem:[%s182_s0] sm:$0xff] }
   0x2   :  { %7 = vsyncpa [#allocation3], 0  ;;  %v15_v1 = vsel %vm14_vm0, %v12_v0, -inf  ;;  %v145_v2 = vmov 0   ;;  %v13_v3 = vld [vmem:[%s183_s1] sm:$0xff]  ;;  %v32_v7 = vlaneseq  ;;  %v27_v14 = vsel %vm14_vm0, %v12_v0, 0.0 }
   0x3   :  { %118 = vset.pattern.permute.xlu0 %v145_v2  ;;  %vm42_vm2 = vcmp.ne.s32.totalorder %v13_v3, 4294967196  ;;  %vm45_vm3 = vcmask 7168   ;;  %v146_v26 = vmov 0.0   ;;  %s147_s14 = smov [#allocation2]  }
   0x4   :  { %16 = vmax.xlane.f32.xlu0 %v15_v1  ;;  %v170_v8 = vand.u32 127, %v32_v7  ;;  %v108_v27 = vsel %vm42_vm2, 1.0, %v146_v26  ;;  %v79_v51 = vshrl.u32 %v32_v7, 7  ;;  %s100_s15 = sshll.u32 %s147_s14, 4  ;;  %s101_s15 = int_to_ptr.vmem [resolvable:$true] %s100_s15 }
   0x5   :  { %v68_v29 = vsel %vm45_vm3, %v108_v27, 0.0  ;;  %s123_s16 = scalar_lea.vmem %s101_s15, 128  ;;  %p128_p1 = scmp.lt.s32.totalorder %s101_s15, %s101_s15 }
   0x6   :  { %vm80_vm4 = vcmp.eq.s32.totalorder %v79_v51, 0  ;;  %vm85_vm5 = vcmp.eq.s32.totalorder %v170_v8, 2  ;;  %vm83_vm6 = vcmp.eq.s32.totalorder %v170_v8, 1  ;;  %vm81_vm7 = vcmp.eq.s32.totalorder %v170_v8, 0  ;;  %p124_p0 = scmp.ne.s32.totalorder %s101_s15, %s123_s16  ;;  %p129_p2 = scmp.lt.s32.totalorder %s123_s16, %s123_s16 }
   0x7   :  { %vm86_vm8 = vmand %vm80_vm4, %vm85_vm5 }
   0x8   :  { %vm84_vm9 = vmand %vm80_vm4, %vm83_vm6  ;;  %p130_p3 = por %p129_p2, %p128_p1 }
   0x9   :  { %vm82_vm10 = vmand %vm80_vm4, %vm81_vm7 }
   0xa   :  { %p131_p4 = pnand %p130_p3, %p124_p0 }
  0x1a   :  { %35 = vperm.xlu0 %118, %v13_v3  }
  0x8d   :  { %v17_v4 = vpop.xlane.xlu0 %16 }
  0x8e   :  { %v18_v5 = vsub.f32 %v12_v0, %v17_v4 }
  0x90   :  { %v19_v6 = vmul.f32 1.442695, %v18_v5 }
  0x92   :  { %119 = vpow2.f32 %v19_v6 }
  0x95   :  { %v36_v9 = vpop.permute.xlu0 %35 }
  0x96   :  { %vm37_vm1 = vcmp.eq.s32.totalorder %v170_v8, %v36_v9 }
  0x97   :  { %v38_v11 = vsel %vm37_vm1, %v12_v0, 0.0 }
  0x98   :  { %v39_v13 = vsel %vm14_vm0, %v38_v11, 0.0 }
  0x9f   :  { %v120_v10 = vpop.eup %119 }
  0xa0   :  { %v21_v12 = vsel %vm14_vm0, %v120_v10, 0.0 }
  0xa1   :  { %22 = vadd.xlane.f32.xlu1 %v21_v12 }
  0xa5   :  { %40 = vadd.xlane.f32.xlu1 %v39_v13 }
  0xa9   :  { %28 = vadd.xlane.f32.xlu1 %v27_v14 }
 0x12a   :  { %v23_v15 = vpop.xlane.xlu1 %22 }
 0x12b   :  { %121 = vlog2.f32 %v23_v15 }
 0x12e   :  { %v41_v16 = vpop.xlane.xlu1 %40 }
 0x132   :  { %v29_v22 = vpop.xlane.xlu1 %28 }
 0x138   :  { %v122_v17 = vpop.eup %121 }
 0x139   :  { %v25_v18 = vmul.f32 0.6931472, %v122_v17 }
 0x13b   :  { %v26_v19 = vadd.f32 %v25_v18, %v17_v4 }
 0x13d   :  { %v43_v20 = vsub.f32 %v26_v19, %v41_v16  ;;  %v30_v21 = vmul.f32 32.0, %v26_v19 }
 0x13f   :  { %v44_v23 = vsel %vm42_vm2, %v43_v20, 0.0  ;;  %v31_v24 = vsub.f32 %v30_v21, %v29_v22 }
 0x140   :  { %v56_v25 = vsel %vm45_vm3, %v44_v23, 0.0 }
 0x141   :  { %57 = vadd.xlane.f32.xlu1 %v56_v25  ;;  %v46_v28 = vsel %vm45_vm3, %v31_v24, 0.0 }
 0x145   :  { %47 = vadd.xlane.f32.xlu1 %v46_v28 }
 0x149   :  { %69 = vadd.xlane.f32.xlu1 %v68_v29 }
 0x1ca   :  { %v58_v30 = vpop.xlane.xlu1 %57 }
 0x1cb   :  { %v59_v31 = vrot.slane %v58_v30, 4 }
 0x1cd   :  { %v60_v32 = vadd.f32 %v59_v31, %v58_v30 }
 0x1ce   :  { %v48_v33 = vpop.xlane.xlu1 %47 }
 0x1cf   :  { %v61_v34 = vrot.slane %v60_v32, 2  ;;  %v49_v35 = vrot.slane %v48_v33, 4 }
 0x1d1   :  { %v50_v36 = vadd.f32 %v49_v35, %v48_v33  ;;  %v62_v38 = vadd.f32 %v61_v34, %v60_v32 }
 0x1d2   :  { %v70_v37 = vpop.xlane.xlu1 %69 }
 0x1d3   :  { %v51_v39 = vrot.slane %v50_v36, 2  ;;  %v71_v40 = vrot.slane %v70_v37, 4  ;;  %v63_v43 = vrot.slane %v62_v38, 1 }
 0x1d5   :  { %v72_v41 = vadd.f32 %v71_v40, %v70_v37  ;;  %v52_v42 = vadd.f32 %v51_v39, %v50_v36  ;;  %v64_v48 = vadd.f32 %v63_v43, %v62_v38 }
 0x1d7   :  { %v73_v44 = vrot.slane %v72_v41, 2  ;;  %v53_v45 = vrot.slane %v52_v42, 1 }
 0x1d9   :  { %v74_v46 = vadd.f32 %v73_v44, %v72_v41  ;;  %v54_v47 = vadd.f32 %v53_v45, %v52_v42 }
 0x1db   :  { %109 = vpush %v54_v47  ;;  %v75_v49 = vrot.slane %v74_v46, 1 }
 0x1dc   :  { %111 = vpush %v64_v48 }
 0x1dd   :  { %v76_v50 = vadd.f32 %v75_v49, %v74_v46 }
 0x1df   :  { %113 = vpush %v76_v50 }
 0x20c   :  { %s110_s0 = spop %109 }
 0x20d   :  { %s112_s1 = spop %111  ;;  %v91_v55 = vstv %s110_s0 }
 0x20e   :  { %v89_v53 = vstv %s112_s1 }
 0x210   :  { %s114_s13 = spop %113 }
 0x211   :  { %v87_v52 = vstv %s114_s13 }
 0x212   :  { %v88_v54 = vsel %vm86_vm8, %v87_v52, 0.0 }
 0x213   :  { %v90_v56 = vsel %vm84_vm9, %v89_v53, %v88_v54 }
 0x214   :  { %v92_v57 = vsel %vm82_vm10, %v91_v55, %v90_v56 }
 0x215   :  { %93 = vst [vmem:[#allocation2] sm:$0xff] %v92_v57 }
 0x216   :  { %134 = shalt.err (!%p131_p4)
}
 0x217   :  { %103 = dma.vmem_to_hbm [thread:$0]  %s101_s15, 128, %s184_s2, [#allocation3]  }
 0x218   :  { %143 = dma.done.wait [#allocation3], 128  }
 0x219   :  { %144 = vsyncadd [#allocation3], 4294967168 }
 0x21a   :  { %107 = vsyncpa [#allocation3], 1 }

</bundles_post_ra>
